<compile_context>
chip_gen: v7x
topology: tpu7x:2x2x1
jax: 0.10.0
libtpu: 0.0.40
codegen_flags: <defaults>
</compile_context>

<pallas_src>
import math

import jax
import jax.numpy as jnp
from jax.experimental import pallas as pl
from jax.experimental.pallas import tpu as pltpu


def _round_up(x, m):
    return ((x + m - 1) // m) * m


# ----------------------------------------------------------------------------
# Kernel
# ----------------------------------------------------------------------------
# Packed-parameter slab layout (float32), identical to v1:
#   w_slab : (200, 128)
#     rows   0:  6, cols 0:128 -> fused fc1 weight [fc1_rot | fc1_trans]         (6, 128)
#     rows   8:136, cols 0: 64 -> block-diag fc2  [[fc2_rot, 0], [0, fc2_trans]] (128, 64)
#     rows 136:200, cols 0:  9 -> block-diag fc3  [[fc3_rot, 0], [0, fc3_trans]] (64, 9)
#                   cols 9: 16 stay zero (lane padding of the fc3 output)
#   b_slab : (3, 128)
#     row 0 -> fused fc1 bias, row 1 lanes 0:64 -> fc2 bias,
#     row 2 lanes 0:9 -> fc3 bias (0:6 rot6d, 6:9 translation), 9:16 zero.
def _head_kernel(pts_ref, wslab_ref, bslab_ref, out_ref, acc_ref):
    k = pl.program_id(1)
    nk = pl.num_programs(1)

    @pl.when(k == 0)
    def _init():
        acc_ref[...] = jnp.zeros_like(acc_ref)

    # ---- streaming phase: weighted partial sums over this N chunk ----------
    # pts block is (7, tb, tn); each plane is a vreg-aligned (tb, tn) slab,
    # so the per-plane multiplies need no relayout of the weights plane.
    w = pts_ref[6]                                                     # (tb, tn)
    cols = [jnp.sum(pts_ref[p] * w, axis=-1, keepdims=True) for p in range(6)]
    cols.append(jnp.sum(w, axis=-1, keepdims=True))                    # weight sum
    cols.append(jnp.zeros_like(cols[0]))                               # pad to 8 lanes
    acc_ref[...] += jnp.concatenate(cols, axis=-1)                     # (tb, 8)

    # ---- epilogue on the last N chunk: fused MLP + 6d -> R + store ----------
    @pl.when(k == nk - 1)
    def _finalize():
        acc = acc_ref[...]
        inv_sum = pl.reciprocal(acc[:, 6:7] + 0.0001, approx=True)     # EUP, free slot
        x = acc[:, 0:6] * inv_sum        # == cat([src_mean, src_corres_mean], dim=1)

        w1 = wslab_ref[pl.ds(0, 6), :]                 # (6, 128)
        w2 = wslab_ref[pl.ds(8, 128), pl.ds(0, 64)]    # (128, 64) block-diagonal
        w3 = wslab_ref[pl.ds(136, 64), pl.ds(0, 16)]   # (64, 16)  block-diagonal (cols 9:16 zero)
        b1 = bslab_ref[pl.ds(0, 1), :]                 # (1, 128)
        b2 = bslab_ref[pl.ds(1, 1), pl.ds(0, 64)]      # (1, 64)
        b3 = bslab_ref[pl.ds(2, 1), pl.ds(0, 16)]      # (1, 16)

        h = jnp.maximum(jnp.dot(x, w1, preferred_element_type=jnp.float32) + b1, 0.0)
        h = jnp.maximum(jnp.dot(h, w2, preferred_element_type=jnp.float32) + b2, 0.0)
        y = jnp.dot(h, w3, preferred_element_type=jnp.float32) + b3    # (tb, 16)
        # lanes 0:6 = rot6d, 6:9 = translation, 9:16 = exact zeros.

        # ---- 6d -> rotation matrix (pytorch3d convention: rows = b1,b2,b3) --
        # rsqrt(max(|v|^2, eps^2)) == 1 / max(|v|, eps)  (F.normalize, eps=1e-12)
        eps2 = 1e-24
        a1 = y[:, 0:3]
        a2 = y[:, 3:6]
        b1v = a1 * jax.lax.rsqrt(jnp.maximum(jnp.sum(a1 * a1, axis=1, keepdims=True), eps2))
        a2p = a2 - jnp.sum(b1v * a2, axis=1, keepdims=True) * b1v
        b2v = a2p * jax.lax.rsqrt(jnp.maximum(jnp.sum(a2p * a2p, axis=1, keepdims=True), eps2))

        b1x, b1y, b1z = b1v[:, 0:1], b1v[:, 1:2], b1v[:, 2:3]
        b2x, b2y, b2z = b2v[:, 0:1], b2v[:, 1:2], b2v[:, 2:3]
        b3v = jnp.concatenate(
            [b1y * b2z - b1z * b2y,
             b1z * b2x - b1x * b2z,
             b1x * b2y - b1y * b2x],
            axis=1)                                                    # (tb, 3)

        # lanes 0:9 rotation rows, 9:12 translation, 12:16 zero padding
        out_ref[...] = jnp.concatenate([b1v, b2v, b3v, y[:, 6:13]], axis=1)  # (tb, 16)


# ----------------------------------------------------------------------------
# Parameter packing (identical layout to v1)
# ----------------------------------------------------------------------------
def pack_params(p):
    """Pack per-layer (in,out) weights and (1,out) biases into the two slabs."""
    w = jnp.zeros((200, 128), jnp.float32)
    w = w.at[0:6,     0:64 ].set(p["w1r"])    # fc1_rot   (6, 64)
    w = w.at[0:6,    64:128].set(p["w1t"])    # fc1_trans (6, 64)
    w = w.at[8:72,    0:32 ].set(p["w2r"])    # fc2_rot   (64, 32)
    w = w.at[72:136, 32:64 ].set(p["w2t"])    # fc2_trans (64, 32)
    w = w.at[136:168, 0:6  ].set(p["w3r"])    # fc3_rot   (32, 6)
    w = w.at[168:200, 6:9  ].set(p["w3t"])    # fc3_trans (32, 3)

    b = jnp.zeros((3, 128), jnp.float32)
    b = b.at[0:1,  0:64 ].set(p["b1r"])
    b = b.at[0:1, 64:128].set(p["b1t"])
    b = b.at[1:2,  0:32 ].set(p["b2r"])
    b = b.at[1:2, 32:64 ].set(p["b2t"])
    b = b.at[2:3,  0:6  ].set(p["b3r"])
    b = b.at[2:3,  6:9  ].set(p["b3t"])
    return w, b


# ----------------------------------------------------------------------------
# VMEM-budget-driven tile sizing
# ----------------------------------------------------------------------------
def _pick_vmem_limit():
    """Scoped VMEM limit ~= 75% of physical, capped (v7x -> ~48 MiB, v5e/v6e -> 96 MiB)."""
    phys = 64 * 1024 * 1024
    try:
        info = pltpu.get_tpu_info()
        phys = int(getattr(info, "vmem_capacity_bytes", phys))
    except Exception:
        pass
    if phys < 32 * 1024 * 1024:       # defensive: bogus query result
        phys = 64 * 1024 * 1024
    return min(phys * 3 // 4, 96 * 1024 * 1024)


def _choose_tiles(B, N, vmem_limit, max_block_b):
    # --- batch tiling ("parallel" axis) ---
    B8 = _round_up(B, 8)
    if B8 > max_block_b:
        tb = max_block_b
    elif B8 >= 16:
        tb = _round_up(-(-B8 // 2), 8)   # >=2 parallel batch tiles -> v7x megacore
    else:
        tb = B8
    B_pad = _round_up(B, tb)
    nb = B_pad // tb

    # --- N chunking ("arbitrary" reduction axis) ---
    N128 = _round_up(max(N, 1), 128)
    fixed = (2 * (200 * 128 + 3 * 128) * 4      # double-buffered param slabs
             + tb * 16 * 4 * 2 + tb * 8 * 4     # output block + accumulator
             + (2 << 20))                       # compiler-internal scratch margin
    block_budget = max(7 * tb * 128 * 4, (int(vmem_limit * 0.9) - fixed) // 2)
    max_tn = max(128, (block_budget // (7 * tb * 4)) // 128 * 128)
    nk = -(-N128 // max_tn)
    if nb * nk < 2 and N128 >= 256:
        nk = 2                                  # guarantee DMA/compute overlap
    tn = _round_up(-(-N128 // nk), 128)
    N_pad = tn * nk
    return B_pad, tb, nb, N_pad, tn, nk


# ----------------------------------------------------------------------------
# Wrapper
# ----------------------------------------------------------------------------
def regression_6dr_3dt_head(src, src_corres, weights, w_slab, b_slab, *,
                            max_block_b=256, vmem_limit_bytes=None):
    """src, src_corres: (B, N, 3); weights: (B, N). Returns (B,3,3) rotation, (B,3) translation."""
    B, N, _ = src.shape
    if vmem_limit_bytes is None:
        vmem_limit_bytes = _pick_vmem_limit()
    B_pad, tb, nb, N_pad, tn, nk = _choose_tiles(B, N, int(vmem_limit_bytes), max_block_b)

    # Channel-major slab (7, B, N): planes 0:3 = src xyz, 3:6 = src_corres xyz,
    # plane 6 = weights.  Zero padding is exact (padded lanes/rows have zero
    # weights, so they contribute nothing to the sums).
    # TODO(synk): if the upstream producer can emit this channel-major layout
    # directly, pass it straight through and skip this transpose/concat (it is
    # an extra full HBM streaming pass in front of a memory-bound kernel).
    pts = jnp.concatenate(
        [jnp.transpose(src, (2, 0, 1)),
         jnp.transpose(src_corres, (2, 0, 1)),
         weights[None, :, :]],
        axis=0).astype(jnp.float32)                                    # (7, B, N)
    if B_pad != B or N_pad != N:
        pts = jnp.pad(pts, ((0, 0), (0, B_pad - B), (0, N_pad - N)))

    out = pl.pallas_call(
        _head_kernel,
        grid=(nb, nk),
        in_specs=[
            pl.BlockSpec((7, tb, tn), lambda i, k: (0, i, k)),
            pl.BlockSpec((200, 128), lambda i, k: (0, 0)),
            pl.BlockSpec((3, 128), lambda i, k: (0, 0)),
        ],
        out_specs=pl.BlockSpec((tb, 16), lambda i, k: (i, 0)),
        out_shape=jax.ShapeDtypeStruct((B_pad, 16), jnp.float32),
        scratch_shapes=[pltpu.VMEM((tb, 8), jnp.float32)],
        compiler_params=pltpu.CompilerParams(
            dimension_semantics=("parallel", "arbitrary"),
            vmem_limit_bytes=int(vmem_limit_bytes),
        ),
    )(pts, w_slab, b_slab)

    out = out[:B]
    rotation = out[:, 0:9].reshape(B, 3, 3)    # rows = b1, b2, b3
    translation = out[:, 9:12]
    return rotation, translation


# ----------------------------------------------------------------------------
# Deterministic parameter init (PyTorch Linear-style uniform), stored (in, out)
# ----------------------------------------------------------------------------
def _init_linear(key, fan_in, fan_out):
    k_w, k_b = jax.random.split(key)
    bound = 1.0 / math.sqrt(fan_in)
    W = jax.random.uniform(k_w, (fan_in, fan_out), jnp.float32, -bound, bound)
    b = jax.random.uniform(k_b, (1, fan_out), jnp.float32, -bound, bound)
    return W, b


def init_params(key):
    keys = jax.random.split(key, 6)
    p = {}
    p["w1r"], p["b1r"] = _init_linear(keys[0], 6, 64)
    p["w2r"], p["b2r"] = _init_linear(keys[1], 64, 32)
    p["w3r"], p["b3r"] = _init_linear(keys[2], 32, 6)
    p["w1t"], p["b1t"] = _init_linear(keys[3], 6, 64)
    p["w2t"], p["b2t"] = _init_linear(keys[4], 64, 32)
    # TODO(synk): reference __init__ declares fc3_trans = nn.Linear(64, 3) but the
    # forward feeds it a 32-dim tensor (shape bug in the original module); the
    # runnable interpretation Linear(32, 3) is implemented here.
    p["w3t"], p["b3t"] = _init_linear(keys[5], 32, 3)
    return p


# ----------------------------------------------------------------------------
# Pure-JAX reference of the (unfused) forward, for a sanity check
# ----------------------------------------------------------------------------
def _reference_forward(src, src_corres, weights, p):
    sum_w = jnp.sum(weights, axis=1, keepdims=True) + 0.0001
    wn = (weights / sum_w)[:, :, None]
    src_mean = jnp.sum(wn * src, axis=1)
    cor_mean = jnp.sum(wn * src_corres, axis=1)
    x = jnp.concatenate([src_mean, cor_mean], axis=1)
    relu = lambda t: jnp.maximum(t, 0.0)
    hr = relu(x @ p["w1r"] + p["b1r"])
    hr = relu(hr @ p["w2r"] + p["b2r"])
    rot6 = hr @ p["w3r"] + p["b3r"]
    ht = relu(x @ p["w1t"] + p["b1t"])
    ht = relu(ht @ p["w2t"] + p["b2t"])
    trans = ht @ p["w3t"] + p["b3t"]
    a1, a2 = rot6[:, 0:3], rot6[:, 3:6]
    eps = 1e-12
    b1 = a1 / jnp.maximum(jnp.sqrt(jnp.sum(a1 * a1, axis=1, keepdims=True)), eps)
    a2p = a2 - jnp.sum(b1 * a2, axis=1, keepdims=True) * b1
    b2 = a2p / jnp.maximum(jnp.sqrt(jnp.sum(a2p * a2p, axis=1, keepdims=True)), eps)
    b3 = jnp.cross(b1, b2)
    return jnp.stack([b1, b2, b3], axis=1), trans


# ----------------------------------------------------------------------------
if __name__ == "__main__":
    key = jax.random.PRNGKey(0)
    params = init_params(jax.random.fold_in(key, 1234))
    w_slab, b_slab = pack_params(params)

    # Two small cases: (2, 8) exercises the single-step path; (4, 300) exercises
    # the multi-chunk N-reduction path plus zero padding of N and the batch.
    for (B, N) in [(2, 8), (4, 300)]:
        k_src, k_cor, k_w = jax.random.split(jax.random.fold_in(key, N), 3)
        src = jax.random.normal(k_src, (B, N, 3), jnp.float32)
        src_corres = jax.random.normal(k_cor, (B, N, 3), jnp.float32)
        weights = jax.random.uniform(k_w, (B, N), jnp.float32)

        rotation, translation = regression_6dr_3dt_head(
            src, src_corres, weights, w_slab, b_slab)
        jax.block_until_ready((rotation, translation))

        assert rotation.shape == (B, 3, 3)
        assert translation.shape == (B, 3)

        # loose sanity checks (tolerant of MXU f32 / approx-reciprocal differences)
        rot_ref, trans_ref = _reference_forward(src, src_corres, weights, params)
        assert bool(jnp.allclose(rotation, rot_ref, atol=5e-2, rtol=5e-2)), (B, N)
        assert bool(jnp.allclose(translation, trans_ref, atol=5e-2, rtol=5e-2)), (B, N)
        rrt = jnp.einsum("bij,bkj->bik", rotation, rotation)
        assert bool(jnp.allclose(rrt, jnp.eye(3)[None], atol=1e-2)), (B, N)

    print("KERNEL_OK")
</pallas_src>

<mosaic_0001>
module attributes {stable_mosaic.version = 11 : i64} {
  func.func @_head_kernel(%arg0: i32, %arg1: i32, %arg2: memref<7x8x128xf32, #tpu.memory_space<vmem>>, %arg3: memref<200x128xf32, #tpu.memory_space<vmem>>, %arg4: memref<3x128xf32, #tpu.memory_space<vmem>>, %arg5: memref<8x16xf32, #tpu.memory_space<vmem>>, %arg6: memref<8x8xf32, #tpu.memory_space<vmem>>) attributes {dimension_semantics = [#tpu.dimension_semantics<parallel>, #tpu.dimension_semantics<arbitrary>], iteration_bounds = array<i64: 1, 1>, scalar_prefetch = 0 : i64, scratch_operands = 1 : i64, tpu.core_type = #tpu.core_type<tc>, window_params = [{transform_indices = @transform_0, window_bounds = array<i64: 7, 8, 128>}, {pipeline_mode = #tpu.pipeline_mode<synchronous>, transform_indices = @transform_1, window_bounds = array<i64: 200, 128>}, {pipeline_mode = #tpu.pipeline_mode<synchronous>, transform_indices = @transform_2, window_bounds = array<i64: 3, 128>}, {transform_indices = @transform_3, window_bounds = array<i64: 8, 16>}]} {
    %c0_i32 = arith.constant 0 : i32
    %0 = arith.cmpi eq, %arg1, %c0_i32 : i32
    %1 = arith.extui %0 : i1 to i32
    %c0_i32_0 = arith.constant 0 : i32
    %2 = arith.cmpi ne, %1, %c0_i32_0 : i32
    scf.if %2 {
      %cst_28 = arith.constant 0.000000e+00 : f32
      %45 = vector.broadcast %cst_28 : f32 to vector<8x8xf32>
      %c0_29 = arith.constant 0 : index
      %c0_30 = arith.constant 0 : index
      %46 = vector.load %arg6[%c0_29, %c0_30] : memref<8x8xf32, #tpu.memory_space<vmem>>, vector<8x8xf32>
      tpu.vector_store %arg6[%c0_29, %c0_30], %45 {strides = array<i32>} : memref<8x8xf32, #tpu.memory_space<vmem>>, vector<8x8xf32>,
    } else {
    }
    %c6 = arith.constant 6 : index
    %c0 = arith.constant 0 : index
    %c0_1 = arith.constant 0 : index
    %3 = vector.load %arg2[%c6, %c0, %c0_1] : memref<7x8x128xf32, #tpu.memory_space<vmem>>, vector<1x8x128xf32>
    %4 = vector.shape_cast %3 : vector<1x8x128xf32> to vector<8x128xf32>
    %c0_2 = arith.constant 0 : index
    %c0_3 = arith.constant 0 : index
    %c0_4 = arith.constant 0 : index
    %5 = vector.load %arg2[%c0_2, %c0_3, %c0_4] : memref<7x8x128xf32, #tpu.memory_space<vmem>>, vector<1x8x128xf32>
    %6 = vector.shape_cast %5 : vector<1x8x128xf32> to vector<8x128xf32>
    %7 = arith.mulf %6, %4 : vector<8x128xf32>
    %cst = arith.constant dense<0.000000e+00> : vector<8xf32>
    %8 = vector.multi_reduction <add>, %7, %cst [1] : vector<8x128xf32> to vector<8xf32>
    %9 = vector.shape_cast %8 : vector<8xf32> to vector<8x1xf32>
    %c1 = arith.constant 1 : index
    %c0_5 = arith.constant 0 : index
    %c0_6 = arith.constant 0 : index
    %10 = vector.load %arg2[%c1, %c0_5, %c0_6] : memref<7x8x128xf32, #tpu.memory_space<vmem>>, vector<1x8x128xf32>
    %11 = vector.shape_cast %10 : vector<1x8x128xf32> to vector<8x128xf32>
    %12 = arith.mulf %11, %4 : vector<8x128xf32>
    %cst_7 = arith.constant dense<0.000000e+00> : vector<8xf32>
    %13 = vector.multi_reduction <add>, %12, %cst_7 [1] : vector<8x128xf32> to vector<8xf32>
    %14 = vector.shape_cast %13 : vector<8xf32> to vector<8x1xf32>
    %c2 = arith.constant 2 : index
    %c0_8 = arith.constant 0 : index
    %c0_9 = arith.constant 0 : index
    %15 = vector.load %arg2[%c2, %c0_8, %c0_9] : memref<7x8x128xf32, #tpu.memory_space<vmem>>, vector<1x8x128xf32>
    %16 = vector.shape_cast %15 : vector<1x8x128xf32> to vector<8x128xf32>
    %17 = arith.mulf %16, %4 : vector<8x128xf32>
    %cst_10 = arith.constant dense<0.000000e+00> : vector<8xf32>
    %18 = vector.multi_reduction <add>, %17, %cst_10 [1] : vector<8x128xf32> to vector<8xf32>
    %19 = vector.shape_cast %18 : vector<8xf32> to vector<8x1xf32>
    %c3 = arith.constant 3 : index
    %c0_11 = arith.constant 0 : index
    %c0_12 = arith.constant 0 : index
    %20 = vector.load %arg2[%c3, %c0_11, %c0_12] : memref<7x8x128xf32, #tpu.memory_space<vmem>>, vector<1x8x128xf32>
    %21 = vector.shape_cast %20 : vector<1x8x128xf32> to vector<8x128xf32>
    %22 = arith.mulf %21, %4 : vector<8x128xf32>
    %cst_13 = arith.constant dense<0.000000e+00> : vector<8xf32>
    %23 = vector.multi_reduction <add>, %22, %cst_13 [1] : vector<8x128xf32> to vector<8xf32>
    %24 = vector.shape_cast %23 : vector<8xf32> to vector<8x1xf32>
    %c4 = arith.constant 4 : index
    %c0_14 = arith.constant 0 : index
    %c0_15 = arith.constant 0 : index
    %25 = vector.load %arg2[%c4, %c0_14, %c0_15] : memref<7x8x128xf32, #tpu.memory_space<vmem>>, vector<1x8x128xf32>
    %26 = vector.shape_cast %25 : vector<1x8x128xf32> to vector<8x128xf32>
    %27 = arith.mulf %26, %4 : vector<8x128xf32>
    %cst_16 = arith.constant dense<0.000000e+00> : vector<8xf32>
    %28 = vector.multi_reduction <add>, %27, %cst_16 [1] : vector<8x128xf32> to vector<8xf32>
    %29 = vector.shape_cast %28 : vector<8xf32> to vector<8x1xf32>
    %c5 = arith.constant 5 : index
    %c0_17 = arith.constant 0 : index
    %c0_18 = arith.constant 0 : index
    %30 = vector.load %arg2[%c5, %c0_17, %c0_18] : memref<7x8x128xf32, #tpu.memory_space<vmem>>, vector<1x8x128xf32>
    %31 = vector.shape_cast %30 : vector<1x8x128xf32> to vector<8x128xf32>
    %32 = arith.mulf %31, %4 : vector<8x128xf32>
    %cst_19 = arith.constant dense<0.000000e+00> : vector<8xf32>
    %33 = vector.multi_reduction <add>, %32, %cst_19 [1] : vector<8x128xf32> to vector<8xf32>
    %34 = vector.shape_cast %33 : vector<8xf32> to vector<8x1xf32>
    %cst_20 = arith.constant dense<0.000000e+00> : vector<8xf32>
    %35 = vector.multi_reduction <add>, %4, %cst_20 [1] : vector<8x128xf32> to vector<8xf32>
    %36 = vector.shape_cast %35 : vector<8xf32> to vector<8x1xf32>
    %cst_21 = arith.constant 0.000000e+00 : f32
    %37 = vector.broadcast %cst_21 : f32 to vector<8x1xf32>
    %c0_22 = arith.constant 0 : index
    %c0_23 = arith.constant 0 : index
    %38 = vector.load %arg6[%c0_22, %c0_23] : memref<8x8xf32, #tpu.memory_space<vmem>>, vector<8x8xf32>
    %39 = tpu.concatenate %9, %14, %19, %24, %29, %34, %36, %37 in 1 : vector<8x1xf32>, vector<8x1xf32>, vector<8x1xf32>, vector<8x1xf32>, vector<8x1xf32>, vector<8x1xf32>, vector<8x1xf32>, vector<8x1xf32> -> vector<8x8xf32>
    %40 = arith.addf %38, %39 : vector<8x8xf32>
    %c0_24 = arith.constant 0 : index
    %c0_25 = arith.constant 0 : index
    %41 = vector.load %arg6[%c0_24, %c0_25] : memref<8x8xf32, #tpu.memory_space<vmem>>, vector<8x8xf32>
    tpu.vector_store %arg6[%c0_24, %c0_25], %40 {strides = array<i32>} : memref<8x8xf32, #tpu.memory_space<vmem>>, vector<8x8xf32>,
    %c0_i32_26 = arith.constant 0 : i32
    %42 = arith.cmpi eq, %arg1, %c0_i32_26 : i32
    %43 = arith.extui %42 : i1 to i32
    %c0_i32_27 = arith.constant 0 : i32
    %44 = arith.cmpi ne, %43, %c0_i32_27 : i32
    scf.if %44 {
      %c0_28 = arith.constant 0 : index
      %c0_29 = arith.constant 0 : index
      %45 = vector.load %arg6[%c0_28, %c0_29] : memref<8x8xf32, #tpu.memory_space<vmem>>, vector<8x8xf32>
      %46 = vector.extract_strided_slice %45 {offsets = [0, 6], sizes = [8, 1], strides = [1, 1]} : vector<8x8xf32> to vector<8x1xf32>
      %cst_30 = arith.constant 9.99999974E-5 : f32
      %47 = vector.broadcast %cst_30 : f32 to vector<8x1xf32>
      %48 = arith.addf %46, %47 : vector<8x1xf32>
      %49 = tpu.reciprocal %48 {approx = true} : vector<8x1xf32> -> vector<8x1xf32>
      %50 = vector.extract_strided_slice %45 {offsets = [0, 0], sizes = [8, 6], strides = [1, 1]} : vector<8x8xf32> to vector<8x6xf32>
      %51 = vector.broadcast %49 : vector<8x1xf32> to vector<8x6xf32>
      %52 = arith.mulf %50, %51 : vector<8x6xf32>
      %c0_31 = arith.constant 0 : index
      %c0_32 = arith.constant 0 : index
      %53 = vector.load %arg3[%c0_31, %c0_32] : memref<200x128xf32, #tpu.memory_space<vmem>>, vector<6x128xf32>
      %c8 = arith.constant 8 : index
      %c0_33 = arith.constant 0 : index
      %54 = vector.load %arg3[%c8, %c0_33] : memref<200x128xf32, #tpu.memory_space<vmem>>, vector<128x64xf32>
      %c136 = arith.constant 136 : index
      %c0_34 = arith.constant 0 : index
      %55 = vector.load %arg3[%c136, %c0_34] : memref<200x128xf32, #tpu.memory_space<vmem>>, vector<64x16xf32>
      %c0_35 = arith.constant 0 : index
      %c0_36 = arith.constant 0 : index
      %56 = vector.load %arg4[%c0_35, %c0_36] : memref<3x128xf32, #tpu.memory_space<vmem>>, vector<1x128xf32>
      %c1_37 = arith.constant 1 : index
      %c0_38 = arith.constant 0 : index
      %57 = vector.load %arg4[%c1_37, %c0_38] : memref<3x128xf32, #tpu.memory_space<vmem>>, vector<1x64xf32>
      %c2_39 = arith.constant 2 : index
      %c0_40 = arith.constant 0 : index
      %58 = vector.load %arg4[%c2_39, %c0_40] : memref<3x128xf32, #tpu.memory_space<vmem>>, vector<1x16xf32>
      %cst_41 = arith.constant dense<0.000000e+00> : vector<8x128xf32>
      %59 = tpu.matmul %52, %53, %cst_41 {dimension_numbers = #tpu.dot_dimension_numbers<[1], [0], [0], [1], [0, 0, 1, 1], [], []>} : vector<8x6xf32>, vector<6x128xf32>, vector<8x128xf32> -> vector<8x128xf32>
      %60 = vector.broadcast %56 : vector<1x128xf32> to vector<8x128xf32>
      %61 = arith.addf %59, %60 : vector<8x128xf32>
      %cst_42 = arith.constant 0.000000e+00 : f32
      %62 = vector.broadcast %cst_42 : f32 to vector<8x128xf32>
      %63 = arith.maximumf %61, %62 : vector<8x128xf32>
      %cst_43 = arith.constant dense<0.000000e+00> : vector<8x64xf32>
      %64 = tpu.matmul %63, %54, %cst_43 {dimension_numbers = #tpu.dot_dimension_numbers<[1], [0], [0], [1], [0, 0, 1, 1], [], []>} : vector<8x128xf32>, vector<128x64xf32>, vector<8x64xf32> -> vector<8x64xf32>
      %65 = vector.broadcast %57 : vector<1x64xf32> to vector<8x64xf32>
      %66 = arith.addf %64, %65 : vector<8x64xf32>
      %cst_44 = arith.constant 0.000000e+00 : f32
      %67 = vector.broadcast %cst_44 : f32 to vector<8x64xf32>
      %68 = arith.maximumf %66, %67 : vector<8x64xf32>
      %cst_45 = arith.constant dense<0.000000e+00> : vector<8x16xf32>
      %69 = tpu.matmul %68, %55, %cst_45 {dimension_numbers = #tpu.dot_dimension_numbers<[1], [0], [0], [1], [0, 0, 1, 1], [], []>} : vector<8x64xf32>, vector<64x16xf32>, vector<8x16xf32> -> vector<8x16xf32>
      %70 = vector.broadcast %58 : vector<1x16xf32> to vector<8x16xf32>
      %71 = arith.addf %69, %70 : vector<8x16xf32>
      %72 = vector.extract_strided_slice %71 {offsets = [0, 0], sizes = [8, 3], strides = [1, 1]} : vector<8x16xf32> to vector<8x3xf32>
      %73 = vector.extract_strided_slice %71 {offsets = [0, 3], sizes = [8, 3], strides = [1, 1]} : vector<8x16xf32> to vector<8x3xf32>
      %74 = arith.mulf %72, %72 : vector<8x3xf32>
      %cst_46 = arith.constant dense<0.000000e+00> : vector<8xf32>
      %75 = vector.multi_reduction <add>, %74, %cst_46 [1] : vector<8x3xf32> to vector<8xf32>
      %76 = vector.shape_cast %75 : vector<8xf32> to vector<8x1xf32>
      %cst_47 = arith.constant 1.000000e-24 : f32
      %77 = vector.broadcast %cst_47 : f32 to vector<8x1xf32>
      %78 = arith.maximumf %76, %77 : vector<8x1xf32>
      %79 = math.rsqrt %78 : vector<8x1xf32>
      %80 = vector.broadcast %79 : vector<8x1xf32> to vector<8x3xf32>
      %81 = arith.mulf %72, %80 : vector<8x3xf32>
      %82 = arith.mulf %81, %73 : vector<8x3xf32>
      %cst_48 = arith.constant dense<0.000000e+00> : vector<8xf32>
      %83 = vector.multi_reduction <add>, %82, %cst_48 [1] : vector<8x3xf32> to vector<8xf32>
      %84 = vector.shape_cast %83 : vector<8xf32> to vector<8x1xf32>
      %85 = vector.broadcast %84 : vector<8x1xf32> to vector<8x3xf32>
      %86 = arith.mulf %85, %81 : vector<8x3xf32>
      %87 = arith.subf %73, %86 : vector<8x3xf32>
      %88 = arith.mulf %87, %87 : vector<8x3xf32>
      %cst_49 = arith.constant dense<0.000000e+00> : vector<8xf32>
      %89 = vector.multi_reduction <add>, %88, %cst_49 [1] : vector<8x3xf32> to vector<8xf32>
      %90 = vector.shape_cast %89 : vector<8xf32> to vector<8x1xf32>
      %cst_50 = arith.constant 1.000000e-24 : f32
      %91 = vector.broadcast %cst_50 : f32 to vector<8x1xf32>
      %92 = arith.maximumf %90, %91 : vector<8x1xf32>
      %93 = math.rsqrt %92 : vector<8x1xf32>
      %94 = vector.broadcast %93 : vector<8x1xf32> to vector<8x3xf32>
      %95 = arith.mulf %87, %94 : vector<8x3xf32>
      %96 = vector.extract_strided_slice %81 {offsets = [0, 0], sizes = [8, 1], strides = [1, 1]} : vector<8x3xf32> to vector<8x1xf32>
      %97 = vector.extract_strided_slice %81 {offsets = [0, 1], sizes = [8, 1], strides = [1, 1]} : vector<8x3xf32> to vector<8x1xf32>
      %98 = vector.extract_strided_slice %81 {offsets = [0, 2], sizes = [8, 1], strides = [1, 1]} : vector<8x3xf32> to vector<8x1xf32>
      %99 = vector.extract_strided_slice %95 {offsets = [0, 0], sizes = [8, 1], strides = [1, 1]} : vector<8x3xf32> to vector<8x1xf32>
      %100 = vector.extract_strided_slice %95 {offsets = [0, 1], sizes = [8, 1], strides = [1, 1]} : vector<8x3xf32> to vector<8x1xf32>
      %101 = vector.extract_strided_slice %95 {offsets = [0, 2], sizes = [8, 1], strides = [1, 1]} : vector<8x3xf32> to vector<8x1xf32>
      %102 = arith.mulf %97, %101 : vector<8x1xf32>
      %103 = arith.mulf %98, %100 : vector<8x1xf32>
      %104 = arith.subf %102, %103 : vector<8x1xf32>
      %105 = arith.mulf %98, %99 : vector<8x1xf32>
      %106 = arith.mulf %96, %101 : vector<8x1xf32>
      %107 = arith.subf %105, %106 : vector<8x1xf32>
      %108 = arith.mulf %96, %100 : vector<8x1xf32>
      %109 = arith.mulf %97, %99 : vector<8x1xf32>
      %110 = arith.subf %108, %109 : vector<8x1xf32>
      %111 = tpu.concatenate %104, %107, %110 in 1 : vector<8x1xf32>, vector<8x1xf32>, vector<8x1xf32> -> vector<8x3xf32>
      %112 = vector.extract_strided_slice %71 {offsets = [0, 6], sizes = [8, 7], strides = [1, 1]} : vector<8x16xf32> to vector<8x7xf32>
      %113 = tpu.concatenate %81, %95, %111, %112 in 1 : vector<8x3xf32>, vector<8x3xf32>, vector<8x3xf32>, vector<8x7xf32> -> vector<8x16xf32>
      %c0_51 = arith.constant 0 : index
      %c0_52 = arith.constant 0 : index
      %114 = vector.load %arg5[%c0_51, %c0_52] : memref<8x16xf32, #tpu.memory_space<vmem>>, vector<8x16xf32>
      tpu.vector_store %arg5[%c0_51, %c0_52], %113 {strides = array<i32>} : memref<8x16xf32, #tpu.memory_space<vmem>>, vector<8x16xf32>,
    } else {
    }
    return
  }
  func.func @transform_0(%arg0: i32, %arg1: i32) -> (i32, i32, i32) {
    %c0_i32 = arith.constant 0 : i32
    %c0_i32_0 = arith.constant 0 : i32
    return %c0_i32, %arg0, %arg1 : i32, i32, i32
  }
  func.func @transform_1(%arg0: i32, %arg1: i32) -> (i32, i32) {
    %c0_i32 = arith.constant 0 : i32
    %c0_i32_0 = arith.constant 0 : i32
    %c0_i32_1 = arith.constant 0 : i32
    return %c0_i32, %c0_i32_0 : i32, i32
  }
  func.func @transform_2(%arg0: i32, %arg1: i32) -> (i32, i32) {
    %c0_i32 = arith.constant 0 : i32
    %c0_i32_0 = arith.constant 0 : i32
    %c0_i32_1 = arith.constant 0 : i32
    return %c0_i32, %c0_i32_0 : i32, i32
  }
  func.func @transform_3(%arg0: i32, %arg1: i32) -> (i32, i32) {
    %c0_i32 = arith.constant 0 : i32
    %c0_i32_0 = arith.constant 0 : i32
    return %arg0, %c0_i32 : i32, i32
  }
}

</mosaic_0001>

<bundles_post_ra>
// kernel: tpu_custom_call.1
= control target key start
LH: loop header
LB: loop body
LE: loop exit
PB: predicated region body
PF: predicated region fallthrough
CT: control target
= control target key end

     0   :  { %8 = vsyncpa [#allocation4], 0  ;;  %s808_s0 = inlined_call_operand.hbm [shape: f32[7,8,128], index: 0, kind: input, shape index: {}]   ;;  %s809_s1 = inlined_call_operand.hbm [shape: f32[200,128], index: 1, kind: input, shape index: {}]   ;;  %s810_s2 = inlined_call_operand.vmem [shape: f32[3,128], index: 2, kind: input, shape index: {}]   ;;  %s811_s3 = inlined_call_operand.hbm [shape: f32[8,16], index: 3, kind: output, shape index: {}]  }
   0x1   :  { %9 = vsyncpa [#allocation7], 0 }
   0x2   :  { %10 = vsyncpa [#allocation5], 0  ;;  %s702_s12 = smov [#allocation3]   ;;  %s630_s16 = scalar_lea.hbm %s808_s0, 896 }
   0x3   :  { %s16_s13 = sshll.u32 %s702_s12, 4  ;;  %p631_p0 = scmp.ne.s32.totalorder %s808_s0, %s630_s16  ;;  %s17_s13 = int_to_ptr.vmem [resolvable:$true] %s16_s13 }
   0x4   :  { %p634_p1 = scmp.lt.u32.totalorder %s630_s16, %s808_s0 }
   0x6   :  { %p636_p2 = pnand %p634_p1, %p631_p0 }
   0x8   :  { %639 = shalt.err (!%p636_p2)
}
   0x9   :  { %s640_s21 = scalar_lea.vmem %s17_s13, 896  ;;  %p645_p4 = scmp.lt.s32.totalorder %s17_s13, %s17_s13 }
   0xa   :  { %p641_p3 = scmp.ne.s32.totalorder %s17_s13, %s640_s21  ;;  %p646_p5 = scmp.lt.s32.totalorder %s640_s21, %s640_s21 }
   0xc   :  { %p647_p6 = por %p646_p5, %p645_p4 }
   0xe   :  { %p648_p7 = pnand %p647_p6, %p641_p3 }
  0x10   :  { %651 = shalt.err (!%p648_p7)
}
  0x11   :  { %s703_s22 = smov 128   ;;  %s704_s23 = smov 8  }
  0x12   :  { %22 = dma.hbm_to_vmem [thread:$0]  %s808_s0, 896, %s17_s13, [#allocation4], %s703_s22, %s703_s22, %s704_s23  }
  0x13   :  { %s705_s26 = smov [#allocation6]   ;;  %s652_s30 = scalar_lea.hbm %s809_s1, 3200 }
  0x14   :  { %s28_s27 = sshll.u32 %s705_s26, 4  ;;  %p653_p8 = scmp.ne.s32.totalorder %s809_s1, %s652_s30  ;;  %s29_s27 = int_to_ptr.vmem [resolvable:$true] %s28_s27 }
  0x15   :  { %p656_p9 = scmp.lt.u32.totalorder %s652_s30, %s809_s1 }
  0x17   :  { %p658_p10 = pnand %p656_p9, %p653_p8 }
  0x19   :  { %661 = shalt.err (!%p658_p10)
}
  0x1a   :  { %s662_s8 = scalar_lea.vmem %s29_s27, 3200  ;;  %p667_p12 = scmp.lt.s32.totalorder %s29_s27, %s29_s27 }
  0x1b   :  { %p663_p11 = scmp.ne.s32.totalorder %s29_s27, %s662_s8  ;;  %p668_p13 = scmp.lt.s32.totalorder %s662_s8, %s662_s8 }
  0x1d   :  { %p669_p0 = por %p668_p13, %p667_p12 }
  0x1f   :  { %p670_p1 = pnand %p669_p0, %p663_p11 }
  0x21   :  { %673 = shalt.err (!%p670_p1)
}
  0x22   :  { %34 = dma.hbm_to_vmem [thread:$0]  %s809_s1, 3200, %s29_s27, [#allocation7], %s703_s22, %s703_s22, %s704_s23  }
  0x23   :  { %696 = dma.done.wait [#allocation4], 896  }
  0x24   :  { %697 = vsyncadd [#allocation4], 4294966400 }
  0x25   :  { %698 = dma.done.wait [#allocation7], 3200  }
  0x26   :  { %699 = vsyncadd [#allocation7], 4294964096  ;;  %v50_v0 = vld [vmem:[#allocation3 + $0x30] sm:$0xff]  ;;  %v51_v1 = vld [vmem:[#allocation3] sm:$0xff]  ;;  %vm47_vm0 = vcmask 64512   ;;  %v706_v13 = vmov 0.0  }
  0x27   :  { %v61_v2 = vld [vmem:[#allocation3 + $0x10] sm:$0xff]  ;;  %v52_v3 = vmul.f32 %v51_v1, %v50_v0  ;;  %v56_v5 = vld [vmem:[#allocation3 + $0x8] sm:$0xff]  ;;  %v66_v6 = vld [vmem:[#allocation3 + $0x18] sm:$0xff]  ;;  %48 = vst.msk [vmem:[#allocation2] sm:$0xff] %vm47_vm0, %v706_v13  ;;  %510 = vmatprep.subr.mxu0 %v706_v13  ;;  %v707_v14 = vmov 6   ;;  %vm83_vm1 = vcmask 7168  }
  0x28   :  { %v62_v4 = vmul.f32 %v61_v2, %v50_v0  ;;  %v57_v7 = vmul.f32 %v56_v5, %v50_v0  ;;  %v67_v8 = vmul.f32 %v66_v6, %v50_v0  ;;  %v71_v9 = vld [vmem:[#allocation3 + $0x20] sm:$0xff]  ;;  %v76_v10 = vld [vmem:[#allocation3 + $0x28] sm:$0xff]  ;;  %622 = vset.pattern.permute.xlu1 %v707_v14  ;;  %623 = vset.pattern.permute.xlu0 %v707_v14  ;;  %vm85_vm2 = vcmask 15360   ;;  %v112_v34 = vld [vmem:[#allocation6] sm:$0x3f]  ;;  %s710_s15 = smov 125  }
  0x29   :  { %53 = vadd.xlane.f32.xlu0 %v52_v3  ;;  %v72_v11 = vmul.f32 %v71_v9, %v50_v0  ;;  %v77_v12 = vmul.f32 %v76_v10, %v50_v0  ;;  %vm87_vm3 = vcmask 23552   ;;  %vm89_vm4 = vcmask 31744   ;;  %v113_v35 = vld [vmem:[#allocation6 + $0x8] sm:$0xff]  ;;  %v114_v36 = vld [vmem:[#allocation6 + $0x10] sm:$0xff]  ;;  %v115_v37 = vld [vmem:[#allocation6 + $0x18] sm:$0xff]  ;;  %s712_s16 = smov 123  }
  0x2a   :  { %63 = vadd.xlane.f32.xlu1 %v62_v4  ;;  %vm91_vm5 = vcmask 39936   ;;  %vm93_vm6 = vcmask 48128   ;;  %vm95_vm7 = vcmask 56320   ;;  %vm147_vm8 = vcmask 1045504   ;;  %v116_v40 = vld [vmem:[#allocation6 + $0x20] sm:$0xff]  ;;  %v117_v42 = vld [vmem:[#allocation6 + $0x28] sm:$0xff] }
  0x2b   :  { %511 = vmatpush3.msk.msra.mxu0 %vm147_vm8, %v112_v34  ;;  %vm708_vm9 = vmmov 0   ;;  %v709_v38 = vmov 0.0|0.0   ;;  %v570_v39 = vpack.c.bf16 %v114_v36, %v113_v35  ;;  %v573_v41 = vpack.c.bf16 %v116_v40, %v115_v37  ;;  %v118_v43 = vld [vmem:[#allocation6 + $0x30] sm:$0xff]  ;;  %v119_v45 = vld [vmem:[#allocation6 + $0x38] sm:$0xff]  ;;  %v120_v46 = vld [vmem:[#allocation6 + $0x40] sm:$0xff]  ;;  %s713_s17 = smov 126  }
  0x2c   :  { %512 = vmatprep.mubr.msk.f32.mxu0 %vm708_vm9, %v706_v13  ;;  %547 = vmatprep.mubr.msk.f32.mxu1 %vm708_vm9, %v706_v13  ;;  %v576_v44 = vpack.c.bf16 %v118_v43, %v117_v42  ;;  %v579_v47 = vpack.c.bf16 %v120_v46, %v119_v45  ;;  %v121_v48 = vld [vmem:[#allocation6 + $0x48] sm:$0xff]  ;;  %v122_v49 = vld [vmem:[#allocation6 + $0x50] sm:$0xff]  ;;  %v123_v51 = vld [vmem:[#allocation6 + $0x58] sm:$0xff]  ;;  %vm301_vm10 = vcmask 523264   ;;  %s714_s18 = smov 124   ;;  %s715_s19 = smov 127  }
  0x2d   :  { %58 = vadd.xlane.f32.xlu0 %v57_v7  ;;  %569 = vmatprep.subr.bf16.mxu1 %v709_v38  ;;  %v582_v50 = vpack.c.bf16 %v122_v49, %v121_v48  ;;  %v124_v52 = vld [vmem:[#allocation6 + $0x60] sm:$0xff]  ;;  %v125_v54 = vld [vmem:[#allocation6 + $0x68] sm:$0xff]  ;;  %v126_v55 = vld [vmem:[#allocation6 + $0x70] sm:$0xff]  ;;  %s716_s20 = smov 2   ;;  %s717_s21 = smov 6   ;;  %vm456_vm11 = vcmask 72704  }
  0x2e   :  { %68 = vadd.xlane.f32.xlu1 %v67_v8  ;;  %v82_v27 = vld [vmem:[#allocation2] sm:$0xff]  ;;  %593 = vmatprep.subr.bf16.mxu0 %v709_v38  ;;  %v585_v53 = vpack.c.bf16 %v124_v52, %v123_v51  ;;  %v588_v56 = vpack.c.bf16 %v126_v55, %v125_v54  ;;  %v127_v59 = vld [vmem:[#allocation6 + $0x78] sm:$0xff]  ;;  %v129_v62 = vld [vmem:[#allocation6 + $0x88] sm:$0xff]  ;;  %s718_s22 = smov [#allocation8]   ;;  %vm458_vm12 = vcmask 130048  }
  0x2f   :  { %571 = vmatpush3.bf16.msra.mxu1 %v570_v39  ;;  %v128_v60 = vld [vmem:[#allocation6 + $0x80] sm:$0xff]  ;;  %v130_v63 = vld [vmem:[#allocation6 + $0x90] sm:$0xff]  ;;  %v133_v4 = vld [vmem:[#allocation6 + $0xa8] sm:$0xff]  ;;  %s466_s23 = sshll.u32 %s718_s22, 4  ;;  %s467_s23 = int_to_ptr.vmem [resolvable:$true] %s466_s23 }
  0x30   :  { %572 = vmatprep.subr.bf16.mxu1 %v709_v38  ;;  %v591_v61 = vpack.c.bf16 %v128_v60, %v127_v59  ;;  %v594_v1 = vpack.c.bf16 %v130_v63, %v129_v62  ;;  %v132_v2 = vld [vmem:[#allocation6 + $0xa0] sm:$0xff]  ;;  %v134_v5 = vld [vmem:[#allocation6 + $0xb0] sm:$0xff]  ;;  %s674_s24 = scalar_lea.vmem %s467_s23, 128  ;;  %p679_p3 = scmp.lt.s32.totalorder %s467_s23, %s467_s23 }
  0x31   :  { %73 = vadd.xlane.f32.xlu0 %v72_v11  ;;  %v600_v6 = vpack.c.bf16 %v134_v5, %v133_v4  ;;  %v476_v7 = vld [vmem:[%s810_s2] ss:$0 sm:$0xff]  ;;  %p675_p2 = scmp.ne.s32.totalorder %s467_s23, %s674_s24  ;;  %p680_p4 = scmp.lt.s32.totalorder %s674_s24, %s674_s24 }
  0x32   :  { %78 = vadd.xlane.f32.xlu1 %v77_v12  ;;  %v135_v12 = vld [vmem:[#allocation6 + $0xb8] sm:$0xff] }
  0x33   :  { %574 = vmatpush3.bf16.msra.mxu1 %v573_v41  ;;  %p681_p5 = por %p680_p4, %p679_p3 }
  0x34   :  { %575 = vmatprep.subr.bf16.mxu1 %v709_v38 }
  0x35   :  { %80 = vadd.xlane.f32.xlu0 %v50_v0  ;;  %v131_v0 = vld [vmem:[#allocation6 + $0x98] sm:$0xff]  ;;  %p682_p6 = pnand %p681_p5, %p675_p2 }
  0x36   :  { %v597_v3 = vpack.c.bf16 %v132_v2, %v131_v0 }
  0x37   :  { %577 = vmatpush3.bf16.msra.mxu1 %v576_v44 }
  0x38   :  { %578 = vmatprep.subr.bf16.mxu1 %v709_v38 }
  0x3b   :  { %580 = vmatpush3.bf16.msra.mxu1 %v579_v47 }
  0x3c   :  { %581 = vmatprep.subr.bf16.mxu1 %v709_v38 }
  0x3f   :  { %583 = vmatpush3.bf16.msra.mxu1 %v582_v50 }
  0x40   :  { %584 = vmatprep.subr.bf16.mxu1 %v709_v38 }
  0x43   :  { %586 = vmatpush3.bf16.msra.mxu1 %v585_v53 }
  0x44   :  { %587 = vmatprep.subr.bf16.mxu1 %v709_v38 }
  0x47   :  { %589 = vmatpush3.bf16.msra.mxu1 %v588_v56 }
  0x48   :  { %590 = vmatprep.subr.bf16.mxu1 %v709_v38 }
  0x4b   :  { %592 = vmatpush3.bf16.msra.mxu1 %v591_v61 }
  0xb6   :  { %v54_v15 = vpop.xlane.xlu0 %53 }
  0xb7   :  { %v64_v16 = vpop.xlane.xlu1 %63 }
  0xba   :  { %v59_v17 = vpop.xlane.xlu0 %58 }
  0xbb   :  { %v69_v18 = vpop.xlane.xlu1 %68  ;;  %v84_v19 = vsel %vm83_vm1, %v54_v15, %v59_v17  ;;  %v479_v15 = vld [vmem:[%s810_s2 + $0x1] ss:$0 sm:$0xff] }
  0xbc   :  { %v86_v20 = vsel %vm85_vm2, %v84_v19, %v64_v16 }
  0xbd   :  { %v88_v21 = vsel %vm87_vm3, %v86_v20, %v69_v18  ;;  %v480_v20 = vld [vmem:[%s810_s2 + $0x2] ss:$0 sm:$0xff]  ;;  %s711_s2 = smov 3  }
  0xbe   :  { %v74_v22 = vpop.xlane.xlu0 %73 }
  0xbf   :  { %v90_v23 = vsel %vm89_vm4, %v88_v21, %v74_v22  ;;  %v79_v24 = vpop.xlane.xlu1 %78 }
  0xc0   :  { %v92_v25 = vsel %vm91_vm5, %v90_v23, %v79_v24 }
  0xc2   :  { %v81_v26 = vpop.xlane.xlu0 %80 }
  0xc3   :  { %v94_v28 = vsel %vm93_vm6, %v92_v25, %v81_v26 }
  0xc4   :  { %v96_v29 = vsel %vm95_vm7, %v94_v28, 0.0 }
  0xc5   :  { %v97_v30 = vadd.f32 %v96_v29, %v82_v27 }
  0xc7   :  { %99 = vst.msk [vmem:[#allocation2] sm:$0xff] %vm47_vm0, %v97_v30 }
  0xce   :  { %v103_v31 = vld [vmem:[#allocation2] sm:$0xff] }
  0xcf   :  { %v104_v32 = vadd.f32 0.0001, %v103_v31 }
  0xd1   :  { %624 = vrcp.f32 %v104_v32 }
  0xdb   :  { %v625_v33 = vpop.eup %624 }
  0xdc   :  { %108 = vperm.xlu1 %622, %v625_v33  }
 0x15b   :  { %v109_v57 = vpop.permute.xlu1 %108 }
 0x15c   :  { %v111_v58 = vmul.f32 %v109_v57, %v103_v31 }
 0x15e   :  { %513 = vmatmul.mubr.msk.f32.vlgmr.msra.gmra.mrb[0].mxu0 %vm93_vm6, %v111_v58 }
 0x15f   :  { %566 = vmatprep.mubr.msk.f32.mxu0 %vm708_vm9, %v706_v13  ;;  %595 = vmatpush3.bf16.msra.mxu0 %v594_v1  ;;  %v136_v13 = vld [vmem:[#allocation6 + $0xc0] sm:$0xff] }
 0x160   :  { %596 = vmatprep.subr.bf16.mxu0 %v709_v38  ;;  %v603_v14 = vpack.c.bf16 %v136_v13, %v135_v12 }
 0x163   :  { %598 = vmatpush3.bf16.msra.mxu0 %v597_v3 }
 0x164   :  { %599 = vmatprep.subr.bf16.mxu0 %v709_v38 }
 0x167   :  { %601 = vmatpush3.bf16.msra.mxu0 %v600_v6 }
 0x168   :  { %602 = vmatprep.subr.bf16.mxu0 %v709_v38 }
 0x16b   :  { %604 = vmatpush3.bf16.msra.mxu0 %v603_v14 }
 0x231   :  { %v217_v8 = vpop.f32.mrb[0].mxu0 }
 0x232   :  { %v218_v9 = vadd.f32 %v476_v7, %v217_v8  ;;  %v514_v10 = vpop.f32.mrb[1].mxu0 }
 0x234   :  { %v221_v11 = vmax.f32 %v218_v9, 0.0 }
 0x236   :  { %548 = vmatmul.mubr.f32.vlgmr.msra.gmra.mrb[0].mxu1 %v221_v11 }
 0x309   :  { %v292_v16 = vpop.f32.mrb[0].mxu1 }
 0x30a   :  { %v293_v17 = vadd.f32 %v479_v15, %v292_v16  ;;  %v549_v18 = vpop.f32.mrb[1].mxu1 }
 0x30c   :  { %v296_v19 = vmax.f32 %v293_v17, 0.0 }
 0x30e   :  { %567 = vmatmul.mubr.msk.f32.vlgmr.msra.gmra.mrb[2].mxu0 %vm301_vm10, %v296_v19 }
 0x3e1   :  { %v371_v21 = vpop.f32.mrb[2].mxu0 }
 0x3e2   :  { %v372_v22 = vadd.f32 %v480_v20, %v371_v21  ;;  %v568_v23 = vpop.f32.mrb[3].mxu0 }
 0x3e4   :  { %v375_v24 = vmul.f32 %v372_v22, %v372_v22 }
 0x3e6   :  { %v376_v25 = vsel %vm87_vm3, %v375_v24, 0.0 }
 0x3e7   :  { %377 = vadd.xlane.f32.xlu0 %v376_v25 }
 0x3fd   :  { %383 = vrot.lane.b32.xlu0 %v372_v22, %s710_s15 }
 0x474   :  { %v378_v26 = vpop.xlane.xlu0 %377 }
 0x475   :  { %v379_v27 = vmax.f32 %v378_v26, 1e-24 }
 0x477   :  { %626 = vrsqrt.f32 %v379_v27 }
 0x478   :  { %v384_v30 = vpop.permute.xlu0 %383 }
 0x481   :  { %v627_v28 = vpop.eup %626 }
 0x482   :  { %v381_v29 = vmul.f32 %v627_v28, %v372_v22 }
 0x484   :  { %v386_v31 = vmul.f32 %v384_v30, %v381_v29 }
 0x486   :  { %v387_v32 = vsel %vm87_vm3, %v386_v31, 0.0 }
 0x487   :  { %388 = vadd.xlane.f32.xlu1 %v387_v32 }
 0x514   :  { %v389_v33 = vpop.xlane.xlu1 %388 }
 0x515   :  { %v390_v34 = vmul.f32 %v389_v33, %v381_v29 }
 0x517   :  { %392 = vrot.lane.b32.xlu0 %v390_v34, %s711_s2 }
 0x589   :  { %v393_v35 = vpop.permute.xlu0 %392 }
 0x58a   :  { %v395_v36 = vsub.f32 %v372_v22, %v393_v35 }
 0x58c   :  { %v396_v37 = vmul.f32 %v395_v36, %v395_v36 }
 0x58e   :  { %398 = vrot.lane.b32.xlu0 %v396_v37, %s710_s15 }
 0x600   :  { %v399_v38 = vpop.permute.xlu0 %398 }
 0x601   :  { %v401_v39 = vsel %vm87_vm3, %v399_v38, 0.0 }
 0x602   :  { %402 = vadd.xlane.f32.xlu0 %v401_v39 }
 0x68f   :  { %v403_v40 = vpop.xlane.xlu0 %402 }
 0x690   :  { %v404_v41 = vmax.f32 %v403_v40, 1e-24 }
 0x692   :  { %628 = vrsqrt.f32 %v404_v41 }
 0x69c   :  { %v629_v42 = vpop.eup %628 }
 0x69d   :  { %v406_v43 = vmul.f32 %v629_v42, %v395_v36 }
 0x69f   :  { %425 = vrot.lane.b32.xlu0 %v406_v43, %s712_s16  ;;  %412 = vrot.lane.b32.xlu1 %v406_v43, %s713_s17  ;;  %v454_v62 = vsel %vm87_vm3, %v381_v29, %v406_v43 }
 0x6a3   :  { %408 = vrot.lane.b32.xlu1 %v406_v43, %s714_s18 }
 0x6a7   :  { %421 = vrot.lane.b32.xlu1 %v406_v43, %s715_s19 }
 0x711   :  { %v413_v44 = vpop.permute.xlu1 %412  ;;  %v426_v46 = vpop.permute.xlu0 %425 }
 0x712   :  { %v415_v45 = vmul.f32 %v413_v44, %v381_v29  ;;  %v428_v47 = vmul.f32 %v426_v46, %v381_v29 }
 0x714   :  { %417 = vrot.lane.b32.xlu1 %v415_v45, %s715_s19 }
 0x715   :  { %v409_v48 = vpop.permute.xlu1 %408 }
 0x716   :  { %v411_v50 = vmul.f32 %v409_v48, %v381_v29 }
 0x718   :  { %430 = vrot.lane.b32.xlu1 %v428_v47, %s716_s20 }
 0x719   :  { %v422_v49 = vpop.permute.xlu1 %421 }
 0x71a   :  { %v424_v53 = vmul.f32 %v422_v49, %v381_v29 }
 0x786   :  { %v418_v51 = vpop.permute.xlu1 %417 }
 0x787   :  { %v420_v52 = vsub.f32 %v411_v50, %v418_v51 }
 0x789   :  { %442 = vrot.lane.b32.xlu0 %v420_v52, %s716_s20  ;;  %435 = vrot.lane.b32.xlu1 %v420_v52, %s715_s19 }
 0x78a   :  { %v431_v54 = vpop.permute.xlu1 %430 }
 0x78b   :  { %v433_v55 = vsub.f32 %v424_v53, %v431_v54 }
 0x78d   :  { %451 = vrot.lane.b32.xlu0 %v372_v22, %s711_s2  ;;  %439 = vrot.lane.b32.xlu1 %v433_v55, %s715_s19 }
 0x7fb   :  { %v436_v56 = vpop.permute.xlu1 %435  ;;  %v443_v58 = vpop.permute.xlu0 %442 }
 0x7ff   :  { %v440_v57 = vpop.permute.xlu1 %439  ;;  %v452_v63 = vpop.permute.xlu0 %451 }
 0x800   :  { %v445_v59 = vsel %vm83_vm1, %v436_v56, %v440_v57 }
 0x801   :  { %v446_v60 = vsel %vm85_vm2, %v445_v59, %v443_v58 }
 0x802   :  { %448 = vrot.lane.b32.xlu1 %v446_v60, %s717_s21 }
 0x874   :  { %v449_v61 = vpop.permute.xlu1 %448 }
 0x875   :  { %v455_v0 = vsel %vm93_vm6, %v454_v62, %v449_v61 }
 0x876   :  { %v457_v1 = vsel %vm456_vm11, %v455_v0, %v452_v63 }
 0x877   :  { %459 = vst.msk [vmem:[#allocation8] sm:$0xff] %vm458_vm12, %v457_v1 }
 0x878   :  { %685 = shalt.err (!%p682_p6)
}
 0x879   :  { %s686_s27 = scalar_lea.hbm %s811_s3, 128 }
 0x87a   :  { %p687_p7 = scmp.ne.s32.totalorder %s811_s3, %s686_s27  ;;  %p690_p8 = scmp.lt.u32.totalorder %s686_s27, %s811_s3 }
 0x87c   :  { %p692_p9 = pnand %p690_p8, %p687_p7 }
 0x87e   :  { %695 = shalt.err (!%p692_p9)
}
 0x87f   :  { %469 = dma.vmem_to_hbm [thread:$0]  %s467_s23, 128, %s811_s3, [#allocation5]  }
 0x880   :  { %700 = dma.done.wait [#allocation5], 128  }
 0x881   :  { %701 = vsyncadd [#allocation5], 4294967168 }
 0x882   :  { %473 = vsyncpa [#allocation4], 1 }
 0x883   :  { %474 = vsyncpa [#allocation7], 1 }
 0x884   :  { %475 = vsyncpa [#allocation5], 1 }

</bundles_post_ra>
